<compile_context>
chip_gen: v7x
topology: tpu7x:2x2x1
jax: 0.10.0
libtpu: 0.0.40
codegen_flags: <defaults>
</compile_context>

<pallas_src>
import jax
import jax.numpy as jnp
from jax import lax
from jax.experimental import pallas as pl
from jax.experimental.pallas import tpu as pltpu


# ----------------------------------------------------------------------------
# Fused Pallas kernel: all skip blocks + final L2 norm, one graph per grid step.
# ----------------------------------------------------------------------------
def gnn_skip_stage_kernel(a_ref, x_ref, w1_ref, w2_ref, b_ref, o_ref):
    """Fused GNNSkipStage (skipsum, skip_every=2, relu, l2norm) for one graph:
         for each block blk:
           h = relu(A @ (X @ W1[blk]) + b1[blk])   # GNNLayer(has_act=True)
           h = A @ (h @ W2[blk]) + b2[blk]         # GNNLayer(has_act=False)
           X = relu(X + h)                         # skipsum + block activation
         out = X / max(||X||_2, eps)               # F.normalize(dim=-1)
    """
    a = a_ref[0]                         # (N, N) bf16 — loaded once for all blocks
    x = x_ref[0]                         # (N, D) f32
    biases = b_ref[...]                  # (2*nb, D) f32 — one packed tile

    num_blocks = w1_ref.shape[0]
    for blk in range(num_blocks):        # static unroll (tiny trip count)
        w1 = w1_ref[blk]                 # (D, D) bf16
        w2 = w2_ref[blk]                 # (D, D) bf16
        b1 = biases[2 * blk]             # (D,)   f32, broadcasts over rows
        b2 = biases[2 * blk + 1]         # (D,)   f32

        # layer 1: GCN conv + ReLU (bf16 MXU operands, f32 accumulation)
        h = jnp.dot(x.astype(jnp.bfloat16), w1,
                    preferred_element_type=jnp.float32)
        h = jnp.dot(a, h.astype(jnp.bfloat16),
                    preferred_element_type=jnp.float32) + b1
        h = jnp.maximum(h, 0.0)

        # layer 2: GCN conv, no activation
        h = jnp.dot(h.astype(jnp.bfloat16), w2,
                    preferred_element_type=jnp.float32)
        h = jnp.dot(a, h.astype(jnp.bfloat16),
                    preferred_element_type=jnp.float32) + b2

        # skipsum + activation (kept in f32 on the VPU; v5e has no bf16 VALU)
        x = jnp.maximum(x + h, 0.0)

    # L2-norm epilogue: x * rsqrt(max(sum(x^2), eps^2))  ==  x / max(||x||, eps)
    ssq = jnp.sum(x * x, axis=-1, keepdims=True)
    inv_norm = lax.rsqrt(jnp.maximum(ssq, 1e-24))
    o_ref[0] = x * inv_norm


# ----------------------------------------------------------------------------
# Wrapper
# ----------------------------------------------------------------------------
def gnn_skip_stage(a_bf16, x, w1s_bf16, w2s_bf16, biases):
    """a_bf16: (G,N,N) bf16, x: (G,N,D) f32, w*s: (nb,D,D) bf16, biases: (2*nb,D) f32.

    NOTE: x is donated to the output buffer (input_output_aliases={1: 0}).
    """
    g, n, d = x.shape
    nb = w1s_bf16.shape[0]

    # per graph & block: 2 layers x (X@W: 2*N*D^2 + A@H: 2*N^2*D) flops
    flops = g * nb * (4 * n * d * d + 4 * n * n * d)
    bytes_accessed = (a_bf16.size * 2                       # A (bf16) read
                      + x.size * 4 * 2                      # X read + out write (f32)
                      + (w1s_bf16.size + w2s_bf16.size) * 2 # weights (bf16)
                      + biases.size * 4)                    # biases (f32)
    cost = pl.CostEstimate(flops=flops, transcendentals=g * n,
                           bytes_accessed=bytes_accessed)

    return pl.pallas_call(
        gnn_skip_stage_kernel,
        out_shape=jax.ShapeDtypeStruct((g, n, d), x.dtype),
        grid=(g,),
        in_specs=[
            # per-graph blocks
            pl.BlockSpec((1, n, n), lambda i: (i, 0, 0)),     # A
            pl.BlockSpec((1, n, d), lambda i: (i, 0, 0)),     # X
            # shared parameters: constant index_map -> VMEM-resident, no re-DMA
            pl.BlockSpec((nb, d, d), lambda i: (0, 0, 0)),    # W1 stack
            pl.BlockSpec((nb, d, d), lambda i: (0, 0, 0)),    # W2 stack
            pl.BlockSpec((2 * nb, d), lambda i: (0, 0)),      # packed biases
        ],
        out_specs=pl.BlockSpec((1, n, d), lambda i: (i, 0, 0)),
        input_output_aliases={1: 0},   # X input donated as the stage output
        compiler_params=pltpu.CompilerParams(
            dimension_semantics=("parallel",)),               # 2 TCs on v7x
        cost_estimate=cost,
    )(a_bf16, x, w1s_bf16, w2s_bf16, biases)


# ----------------------------------------------------------------------------
# Pure-JAX reference (mirrors the kernel's bf16 operand rounding), batched.
# ----------------------------------------------------------------------------
def gnn_skip_stage_ref(a_bf16, x, w1s_bf16, w2s_bf16, biases):
    for blk in range(w1s_bf16.shape[0]):
        b1 = biases[2 * blk]
        b2 = biases[2 * blk + 1]
        h = jnp.einsum('gnd,de->gne', x.astype(jnp.bfloat16), w1s_bf16[blk],
                       preferred_element_type=jnp.float32)
        h = jnp.einsum('gnm,gme->gne', a_bf16, h.astype(jnp.bfloat16),
                       preferred_element_type=jnp.float32) + b1
        h = jnp.maximum(h, 0.0)
        h = jnp.einsum('gnd,de->gne', h.astype(jnp.bfloat16), w2s_bf16[blk],
                       preferred_element_type=jnp.float32)
        h = jnp.einsum('gnm,gme->gne', a_bf16, h.astype(jnp.bfloat16),
                       preferred_element_type=jnp.float32) + b2
        x = jnp.maximum(x + h, 0.0)
    nrm = jnp.sqrt(jnp.sum(x * x, axis=-1, keepdims=True))
    return x / jnp.maximum(nrm, 1e-12)


# ----------------------------------------------------------------------------
# Parameter / input construction (deterministic, synthetic)
# ----------------------------------------------------------------------------
def build_params(key, num_blocks, dim):
    k1, k2, k3 = jax.random.split(key, 3)
    scale = 1.0 / jnp.sqrt(dim)
    w1s = jax.random.normal(k1, (num_blocks, dim, dim), jnp.float32) * scale
    w2s = jax.random.normal(k2, (num_blocks, dim, dim), jnp.float32) * scale
    # biases packed: row 2*blk -> layer-1 bias, row 2*blk+1 -> layer-2 bias
    biases = jax.random.normal(k3, (2 * num_blocks, dim), jnp.float32) * 0.1
    return w1s, w2s, biases


def build_normalized_adjacency(key, g, n):
    # random symmetric adjacencies with self loops, GCN-normalized, per graph
    a = (jax.random.uniform(key, (g, n, n)) < 0.3).astype(jnp.float32)
    a = jnp.maximum(a, jnp.swapaxes(a, -1, -2))
    a = jnp.minimum(a + jnp.eye(n, dtype=jnp.float32), 1.0)   # add self loops
    deg = jnp.sum(a, axis=-1)
    d_inv_sqrt = 1.0 / jnp.sqrt(deg)
    return a * d_inv_sqrt[..., :, None] * d_inv_sqrt[..., None, :]


if __name__ == "__main__":
    # GNNSkipStage(dim_in=32, dim_out=32, num_layers=4) with skip_every=2
    #   -> 2 GNNSkipBlocks, each with 2 GCN layers; skipsum needs dim_in==dim_out.
    # Batched over G independent small graphs in one launch.
    G, N, D = 8, 16, 32
    NUM_LAYERS, SKIP_EVERY = 4, 2
    NUM_BLOCKS = NUM_LAYERS // SKIP_EVERY

    key = jax.random.PRNGKey(0)
    k_adj, k_x, k_p = jax.random.split(key, 3)

    a_norm = build_normalized_adjacency(k_adj, G, N)
    x = jax.random.normal(k_x, (G, N, D), jnp.float32)        # batch.node_feature
    w1s, w2s, biases = build_params(k_p, NUM_BLOCKS, D)

    # bf16 MXU operands (halves A/W HBM bytes); biases / X stay f32.
    a_bf16 = a_norm.astype(jnp.bfloat16)
    w1s_bf16 = w1s.astype(jnp.bfloat16)
    w2s_bf16 = w2s.astype(jnp.bfloat16)

    # reference computed first (X buffer is donated to the kernel output)
    ref = gnn_skip_stage_ref(a_bf16, x, w1s_bf16, w2s_bf16, biases)

    out = gnn_skip_stage(a_bf16, x, w1s_bf16, w2s_bf16, biases)
    out = jax.block_until_ready(out)

    assert out.shape == (G, N, D), out.shape
    assert bool(jnp.all(jnp.isfinite(out)))
    err = float(jnp.max(jnp.abs(out - ref)))
    assert bool(jnp.allclose(out, ref, atol=1e-3, rtol=1e-2)), err
    print("KERNEL_OK")
</pallas_src>

<mosaic_0001>
module attributes {stable_mosaic.version = 11 : i64} {
  func.func @gnn_skip_stage_kernel(%arg0: i32, %arg1: memref<1x16x16xbf16, #tpu.memory_space<vmem>>, %arg2: memref<1x16x32xf32, #tpu.memory_space<vmem>>, %arg3: memref<2x32x32xbf16, #tpu.memory_space<vmem>>, %arg4: memref<2x32x32xbf16, #tpu.memory_space<vmem>>, %arg5: memref<4x32xf32, #tpu.memory_space<vmem>>, %arg6: memref<1x16x32xf32, #tpu.memory_space<vmem>>) attributes {dimension_semantics = [#tpu.dimension_semantics<parallel>], iteration_bounds = array<i64: 8>, scalar_prefetch = 0 : i64, scratch_operands = 0 : i64, tpu.core_type = #tpu.core_type<tc>, window_params = [{transform_indices = @transform_0, window_bounds = array<i64: 1, 16, 16>}, {transform_indices = @transform_1, window_bounds = array<i64: 1, 16, 32>}, {pipeline_mode = #tpu.pipeline_mode<synchronous>, transform_indices = @transform_2, window_bounds = array<i64: 2, 32, 32>}, {pipeline_mode = #tpu.pipeline_mode<synchronous>, transform_indices = @transform_3, window_bounds = array<i64: 2, 32, 32>}, {pipeline_mode = #tpu.pipeline_mode<synchronous>, transform_indices = @transform_4, window_bounds = array<i64: 4, 32>}, {transform_indices = @transform_5, window_bounds = array<i64: 1, 16, 32>}]} {
    %c0 = arith.constant 0 : index
    %c0_0 = arith.constant 0 : index
    %c0_1 = arith.constant 0 : index
    %0 = vector.load %arg1[%c0, %c0_0, %c0_1] : memref<1x16x16xbf16, #tpu.memory_space<vmem>>, vector<1x16x16xbf16>
    %1 = vector.shape_cast %0 : vector<1x16x16xbf16> to vector<16x16xbf16>
    %c0_2 = arith.constant 0 : index
    %c0_3 = arith.constant 0 : index
    %c0_4 = arith.constant 0 : index
    %2 = vector.load %arg2[%c0_2, %c0_3, %c0_4] : memref<1x16x32xf32, #tpu.memory_space<vmem>>, vector<1x16x32xf32>
    %3 = vector.shape_cast %2 : vector<1x16x32xf32> to vector<16x32xf32>
    %c0_5 = arith.constant 0 : index
    %c0_6 = arith.constant 0 : index
    %4 = vector.load %arg5[%c0_5, %c0_6] : memref<4x32xf32, #tpu.memory_space<vmem>>, vector<4x32xf32>
    %c0_7 = arith.constant 0 : index
    %c0_8 = arith.constant 0 : index
    %c0_9 = arith.constant 0 : index
    %5 = vector.load %arg3[%c0_7, %c0_8, %c0_9] : memref<2x32x32xbf16, #tpu.memory_space<vmem>>, vector<1x32x32xbf16>
    %6 = vector.shape_cast %5 : vector<1x32x32xbf16> to vector<32x32xbf16>
    %c0_10 = arith.constant 0 : index
    %c0_11 = arith.constant 0 : index
    %c0_12 = arith.constant 0 : index
    %7 = vector.load %arg4[%c0_10, %c0_11, %c0_12] : memref<2x32x32xbf16, #tpu.memory_space<vmem>>, vector<1x32x32xbf16>
    %8 = vector.shape_cast %7 : vector<1x32x32xbf16> to vector<32x32xbf16>
    %9 = vector.extract_strided_slice %4 {offsets = [0, 0], sizes = [1, 32], strides = [1, 1]} : vector<4x32xf32> to vector<1x32xf32>
    %10 = vector.shape_cast %9 : vector<1x32xf32> to vector<32xf32>
    %11 = vector.extract_strided_slice %4 {offsets = [1, 0], sizes = [1, 32], strides = [1, 1]} : vector<4x32xf32> to vector<1x32xf32>
    %12 = vector.shape_cast %11 : vector<1x32xf32> to vector<32xf32>
    %13 = arith.truncf %3 : vector<16x32xf32> to vector<16x32xbf16>
    %cst = arith.constant dense<0.000000e+00> : vector<16x32xf32>
    %14 = tpu.matmul %13, %6, %cst {dimension_numbers = #tpu.dot_dimension_numbers<[1], [0], [0], [1], [0, 0, 1, 1], [], []>} : vector<16x32xbf16>, vector<32x32xbf16>, vector<16x32xf32> -> vector<16x32xf32>
    %15 = arith.truncf %14 : vector<16x32xf32> to vector<16x32xbf16>
    %cst_13 = arith.constant dense<0.000000e+00> : vector<16x32xf32>
    %16 = tpu.matmul %1, %15, %cst_13 {dimension_numbers = #tpu.dot_dimension_numbers<[1], [0], [0], [1], [0, 0, 1, 1], [], []>} : vector<16x16xbf16>, vector<16x32xbf16>, vector<16x32xf32> -> vector<16x32xf32>
    %17 = vector.shape_cast %10 : vector<32xf32> to vector<1x32xf32>
    %18 = vector.broadcast %17 : vector<1x32xf32> to vector<16x32xf32>
    %19 = arith.addf %16, %18 : vector<16x32xf32>
    %cst_14 = arith.constant 0.000000e+00 : f32
    %20 = vector.broadcast %cst_14 : f32 to vector<16x32xf32>
    %21 = arith.maximumf %19, %20 : vector<16x32xf32>
    %22 = arith.truncf %21 : vector<16x32xf32> to vector<16x32xbf16>
    %cst_15 = arith.constant dense<0.000000e+00> : vector<16x32xf32>
    %23 = tpu.matmul %22, %8, %cst_15 {dimension_numbers = #tpu.dot_dimension_numbers<[1], [0], [0], [1], [0, 0, 1, 1], [], []>} : vector<16x32xbf16>, vector<32x32xbf16>, vector<16x32xf32> -> vector<16x32xf32>
    %24 = arith.truncf %23 : vector<16x32xf32> to vector<16x32xbf16>
    %cst_16 = arith.constant dense<0.000000e+00> : vector<16x32xf32>
    %25 = tpu.matmul %1, %24, %cst_16 {dimension_numbers = #tpu.dot_dimension_numbers<[1], [0], [0], [1], [0, 0, 1, 1], [], []>} : vector<16x16xbf16>, vector<16x32xbf16>, vector<16x32xf32> -> vector<16x32xf32>
    %26 = vector.shape_cast %12 : vector<32xf32> to vector<1x32xf32>
    %27 = vector.broadcast %26 : vector<1x32xf32> to vector<16x32xf32>
    %28 = arith.addf %25, %27 : vector<16x32xf32>
    %29 = arith.addf %3, %28 : vector<16x32xf32>
    %cst_17 = arith.constant 0.000000e+00 : f32
    %30 = vector.broadcast %cst_17 : f32 to vector<16x32xf32>
    %31 = arith.maximumf %29, %30 : vector<16x32xf32>
    %c1 = arith.constant 1 : index
    %c0_18 = arith.constant 0 : index
    %c0_19 = arith.constant 0 : index
    %32 = vector.load %arg3[%c1, %c0_18, %c0_19] : memref<2x32x32xbf16, #tpu.memory_space<vmem>>, vector<1x32x32xbf16>
    %33 = vector.shape_cast %32 : vector<1x32x32xbf16> to vector<32x32xbf16>
    %c1_20 = arith.constant 1 : index
    %c0_21 = arith.constant 0 : index
    %c0_22 = arith.constant 0 : index
    %34 = vector.load %arg4[%c1_20, %c0_21, %c0_22] : memref<2x32x32xbf16, #tpu.memory_space<vmem>>, vector<1x32x32xbf16>
    %35 = vector.shape_cast %34 : vector<1x32x32xbf16> to vector<32x32xbf16>
    %36 = vector.extract_strided_slice %4 {offsets = [2, 0], sizes = [1, 32], strides = [1, 1]} : vector<4x32xf32> to vector<1x32xf32>
    %37 = vector.shape_cast %36 : vector<1x32xf32> to vector<32xf32>
    %38 = vector.extract_strided_slice %4 {offsets = [3, 0], sizes = [1, 32], strides = [1, 1]} : vector<4x32xf32> to vector<1x32xf32>
    %39 = vector.shape_cast %38 : vector<1x32xf32> to vector<32xf32>
    %40 = arith.truncf %31 : vector<16x32xf32> to vector<16x32xbf16>
    %cst_23 = arith.constant dense<0.000000e+00> : vector<16x32xf32>
    %41 = tpu.matmul %40, %33, %cst_23 {dimension_numbers = #tpu.dot_dimension_numbers<[1], [0], [0], [1], [0, 0, 1, 1], [], []>} : vector<16x32xbf16>, vector<32x32xbf16>, vector<16x32xf32> -> vector<16x32xf32>
    %42 = arith.truncf %41 : vector<16x32xf32> to vector<16x32xbf16>
    %cst_24 = arith.constant dense<0.000000e+00> : vector<16x32xf32>
    %43 = tpu.matmul %1, %42, %cst_24 {dimension_numbers = #tpu.dot_dimension_numbers<[1], [0], [0], [1], [0, 0, 1, 1], [], []>} : vector<16x16xbf16>, vector<16x32xbf16>, vector<16x32xf32> -> vector<16x32xf32>
    %44 = vector.shape_cast %37 : vector<32xf32> to vector<1x32xf32>
    %45 = vector.broadcast %44 : vector<1x32xf32> to vector<16x32xf32>
    %46 = arith.addf %43, %45 : vector<16x32xf32>
    %cst_25 = arith.constant 0.000000e+00 : f32
    %47 = vector.broadcast %cst_25 : f32 to vector<16x32xf32>
    %48 = arith.maximumf %46, %47 : vector<16x32xf32>
    %49 = arith.truncf %48 : vector<16x32xf32> to vector<16x32xbf16>
    %cst_26 = arith.constant dense<0.000000e+00> : vector<16x32xf32>
    %50 = tpu.matmul %49, %35, %cst_26 {dimension_numbers = #tpu.dot_dimension_numbers<[1], [0], [0], [1], [0, 0, 1, 1], [], []>} : vector<16x32xbf16>, vector<32x32xbf16>, vector<16x32xf32> -> vector<16x32xf32>
    %51 = arith.truncf %50 : vector<16x32xf32> to vector<16x32xbf16>
    %cst_27 = arith.constant dense<0.000000e+00> : vector<16x32xf32>
    %52 = tpu.matmul %1, %51, %cst_27 {dimension_numbers = #tpu.dot_dimension_numbers<[1], [0], [0], [1], [0, 0, 1, 1], [], []>} : vector<16x16xbf16>, vector<16x32xbf16>, vector<16x32xf32> -> vector<16x32xf32>
    %53 = vector.shape_cast %39 : vector<32xf32> to vector<1x32xf32>
    %54 = vector.broadcast %53 : vector<1x32xf32> to vector<16x32xf32>
    %55 = arith.addf %52, %54 : vector<16x32xf32>
    %56 = arith.addf %31, %55 : vector<16x32xf32>
    %cst_28 = arith.constant 0.000000e+00 : f32
    %57 = vector.broadcast %cst_28 : f32 to vector<16x32xf32>
    %58 = arith.maximumf %56, %57 : vector<16x32xf32>
    %59 = arith.mulf %58, %58 : vector<16x32xf32>
    %cst_29 = arith.constant dense<0.000000e+00> : vector<16xf32>
    %60 = vector.multi_reduction <add>, %59, %cst_29 [1] : vector<16x32xf32> to vector<16xf32>
    %61 = vector.shape_cast %60 : vector<16xf32> to vector<16x1xf32>
    %cst_30 = arith.constant 1.000000e-24 : f32
    %62 = vector.broadcast %cst_30 : f32 to vector<16x1xf32>
    %63 = arith.maximumf %61, %62 : vector<16x1xf32>
    %64 = math.rsqrt %63 : vector<16x1xf32>
    %65 = vector.broadcast %64 : vector<16x1xf32> to vector<16x32xf32>
    %66 = arith.mulf %58, %65 : vector<16x32xf32>
    %c0_31 = arith.constant 0 : index
    %c0_32 = arith.constant 0 : index
    %c0_33 = arith.constant 0 : index
    %67 = vector.load %arg6[%c0_31, %c0_32, %c0_33] : memref<1x16x32xf32, #tpu.memory_space<vmem>>, vector<1x16x32xf32>
    %68 = vector.shape_cast %67 : vector<1x16x32xf32> to vector<16x32xf32>
    %69 = vector.shape_cast %66 : vector<16x32xf32> to vector<1x16x32xf32>
    tpu.vector_store %arg6[%c0_31, %c0_32, %c0_33], %69 {strides = array<i32>} : memref<1x16x32xf32, #tpu.memory_space<vmem>>, vector<1x16x32xf32>,
    return
  }
  func.func @transform_0(%arg0: i32) -> (i32, i32, i32) {
    %c0_i32 = arith.constant 0 : i32
    %c0_i32_0 = arith.constant 0 : i32
    %c0_i32_1 = arith.constant 0 : i32
    return %arg0, %c0_i32, %c0_i32_0 : i32, i32, i32
  }
  func.func @transform_1(%arg0: i32) -> (i32, i32, i32) {
    %c0_i32 = arith.constant 0 : i32
    %c0_i32_0 = arith.constant 0 : i32
    %c0_i32_1 = arith.constant 0 : i32
    return %arg0, %c0_i32, %c0_i32_0 : i32, i32, i32
  }
  func.func @transform_2(%arg0: i32) -> (i32, i32, i32) {
    %c0_i32 = arith.constant 0 : i32
    %c0_i32_0 = arith.constant 0 : i32
    %c0_i32_1 = arith.constant 0 : i32
    %c0_i32_2 = arith.constant 0 : i32
    return %c0_i32, %c0_i32_0, %c0_i32_1 : i32, i32, i32
  }
  func.func @transform_3(%arg0: i32) -> (i32, i32, i32) {
    %c0_i32 = arith.constant 0 : i32
    %c0_i32_0 = arith.constant 0 : i32
    %c0_i32_1 = arith.constant 0 : i32
    %c0_i32_2 = arith.constant 0 : i32
    return %c0_i32, %c0_i32_0, %c0_i32_1 : i32, i32, i32
  }
  func.func @transform_4(%arg0: i32) -> (i32, i32) {
    %c0_i32 = arith.constant 0 : i32
    %c0_i32_0 = arith.constant 0 : i32
    %c0_i32_1 = arith.constant 0 : i32
    return %c0_i32, %c0_i32_0 : i32, i32
  }
  func.func @transform_5(%arg0: i32) -> (i32, i32, i32) {
    %c0_i32 = arith.constant 0 : i32
    %c0_i32_0 = arith.constant 0 : i32
    %c0_i32_1 = arith.constant 0 : i32
    return %arg0, %c0_i32, %c0_i32_0 : i32, i32, i32
  }
}

</mosaic_0001>

<bundles_post_ra>
// kernel: tpu_custom_call.1
= control target key start
LH: loop header
LB: loop body
LE: loop exit
PB: predicated region body
PF: predicated region fallthrough
CT: control target
= control target key end

     0   :  { %10 = vsyncpa [#allocation3], 0  ;;  %s1419_s0 = inlined_call_operand.vmem [shape: bf16[8,16,16], index: 0, kind: input, shape index: {}]   ;;  %s1420_s1 = inlined_call_operand.hbm [shape: f32[8,16,32], index: 1, kind: input, shape index: {}, may-alias: {1,5}]   ;;  %s1421_s2 = inlined_call_operand.vmem [shape: bf16[2,32,32], index: 2, kind: input, shape index: {}]   ;;  %s1422_s3 = inlined_call_operand.vmem [shape: bf16[2,32,32], index: 3, kind: input, shape index: {}]   ;;  %s1423_s4 = inlined_call_operand.vmem [shape: f32[4,32], index: 4, kind: input, shape index: {}]   ;;  %s1424_s5 = inlined_call_operand.hbm [shape: f32[8,16,32], index: 5, kind: output, shape index: {}, may-alias: {1,5}]  }
   0x1   :  { %12 = vsyncpa [#allocation3 + $0x1], 0 }
   0x2   :  { %13 = vsyncpa [#allocation4], 0 }
   0x3   :  { %15 = vsyncpa [#allocation4 + $0x1], 0  ;;  %s1157_s18 = smov 0   ;;  %s1159_s19 = smov 0  }
   0x4   :  { %s1161_s20 = smov 0   ;;  %s1163_s21 = smov 0  }
   0x5 LB: > { %s1178_s22 = sadd.s32 4294967295, %s1117_s21   ;;  %s836_s23 = sadd.s32 4294967294, %s1117_s21   ;;  %s1117_s21 = sphi %s1163_s21, %s1436_s21   ;;  %s1113_s20 = sphi %s1161_s20, %s1435_s20   ;;  %s1109_s19 = sphi %s1159_s19, %s1434_s19   ;;  %s1105_s18 = sphi %s1157_s18, %s1433_s18  }
   0x6   : > { %s1182_s24 = sadd.s32 1, %s1117_s21   ;;  %s54_s25 = sadd.s32 1, %s1113_s20 }
   0x7   : > { %s51_s26 = ssub.s32 %s1117_s21, %s1182_s24  ;;  %p61_p0 = scmp.ne.s32.totalorder %s1113_s20, %s1109_s19 }
   0x8   : > { %p52_p1 = scmp.eq.s32.totalorder %s51_s26, 0  ;;  %p62_p2 = scmp.eq.s32.totalorder %s1117_s21, 0 }
   0x9   : > { %p67_p3 = scmp.ne.s32.totalorder %s1109_s19, %s1105_s18  ;;  %p68_p4 = scmp.eq.s32.totalorder %s1178_s22, 0 }
   0xa   : > { %s1194_s27 = scalar_select %p52_p1, %s1113_s20, %s54_s25  }
   0xb   : > { %p1196_p5 = por %p62_p2, %p61_p0  ;;  %p1200_p6 = por %p68_p4, %p67_p3 }
   0xc   : > { %p154_p7 = scmp.eq.s32.totalorder %s1178_s22, 7  ;;  %p160_p8 = scmp.eq.s32.totalorder %s836_s23, 7 }
   0xd   : > { %p968_p9 = scmp.lt.s32.totalorder %s1117_s21, 8  ;;  %s197_s7 = sand.u32 1, %s1113_s20  }
   0xe   : > { %p1206_p10 = por %p154_p7, %p61_p0  ;;  %p1210_p11 = por %p160_p8, %p67_p3 }
   0xf   : > { %s877_s8 = sshll.u32 %s1117_s21, 8  ;;  %s839_s9 = sshll.u32 %s197_s7, 4 }
  0x10   : > { %s1428_s30 = scalar_select %p1206_p10, 1, 0 }
  0x11   : > { %s1429_s6 = scalar_select %p1210_p11, 1, 0 }
  0x12   : > { %s1219_s12 = scalar_lea.hbm %s1420_s1, %s877_s8  ;;  %s201_s13 = scalar_lea.vmem [#allocation2], %s839_s9 }
  0x13   : > { %s208_s14 = sshll.u32 %s201_s13, 4  ;;  %p1223_p12 = pnand %p968_p9, %p1196_p5  ;;  %s1227_s14 = int_to_ptr.vmem [resolvable:$true] %s208_s14 }
  0x14   : > { %s1229_s16 = scalar_lea.sflag [#allocation3], %s197_s7  ;;  %s1021_s17 = scalar_lea.hbm %s1219_s12, 256 }
  0x15   : > { %p1022_p13 = scmp.ne.s32.totalorder %s1219_s12, %s1021_s17  ;;  %p1023_p0 = pneg %p1223_p12 }
  0x16   : > { %s1026_s26 = scalar_lea.hbm %s1420_s1, 2048  ;;  %p1027_p3 = scmp.lt.u32.totalorder %s1219_s12, %s1420_s1 }
  0x17   : > { %p1024_p1 = pnand %p1023_p0, %p1022_p13  ;;  %p1028_p4 = scmp.lt.u32.totalorder %s1026_s26, %s1021_s17 }
  0x18   : > { %p1030_p7 = scmp.lt.u32.totalorder %s1021_s17, %s1219_s12 }
  0x19   : > { %p1025_p2 = pneg %p1024_p1  ;;  %p1029_p5 = por %p1028_p4, %p1027_p3 }
  0x1b   : > { %p1031_p8 = por %p1030_p7, %p1029_p5 }
  0x1d   : > { %p1032_p9 = pnand %p1031_p8, %p1025_p2 }
  0x1f   : > { %1035 = shalt.err (!%p1032_p9)
}
  0x20   : > { %s1036_s7 = scalar_lea.vmem %s1227_s14, 256  ;;  %s1119_s9 = smov [#allocation2]  }
  0x21   : > { %p1037_p13 = scmp.ne.s32.totalorder %s1227_s14, %s1036_s7  ;;  %s1041_s10 = sshll.u32 %s1119_s9, 4  ;;  %s1042_s10 = int_to_ptr.vmem [resolvable:$false] %s1041_s10 }
  0x22   : > { %s1043_s11 = scalar_lea.vmem %s1042_s10, 512  ;;  %p1044_p10 = scmp.lt.s32.totalorder %s1227_s14, %s1042_s10 }
  0x23   : > { %p1039_p1 = pnand %p1037_p13, %p1023_p0  ;;  %p1045_p3 = scmp.lt.s32.totalorder %s1043_s11, %s1036_s7 }
  0x25   : > { %p1040_p11 = pneg %p1039_p1  ;;  %p1046_p4 = por %p1045_p3, %p1044_p10 }
  0x27   : > { %p1047_p5 = pnand %p1046_p4, %p1040_p11 }
  0x29   : > { %1050 = shalt.err (!%p1047_p5)
}
  0x2a   : > { %s1120_s13 = smov 128   ;;  %s1121_s17 = smov 8  }
  0x2b   : > { %963 = dma.hbm_to_vmem [thread:$0]  (!%p1223_p12), %s1219_s12, 256, %s1227_s14, %s1229_s16, %s1120_s13, %s1120_s13, %s1121_s17  }
  0x2c   : > { %p842_p0 = scmp.ge.s32.totalorder %s1117_s21, 1  ;;  %p216_p2 = scmp.lt.s32.totalorder %s1117_s21, 9 }
  0x2e   : > { %p217_p7 = pnand %p842_p0, %p216_p2 }
  0x2f   : > { %s1260_s23 = sand.u32 (!%p217_p7), 1, %s1109_s19  }
  0x30   : > { %220 = sbr.rel (%p217_p7) target bundleno = 2001 (0x7d1), region = 40  ;;  %s843_s25 = sshll.u32 (!%p217_p7), %s1260_s23, 4 }
  0x31   : > { %s223_s26 = scalar_lea.sflag (!%p217_p7), [#allocation3], %s1260_s23  ;;  %s226_s28 = scalar_lea.vmem (!%p217_p7), [#allocation2], %s843_s25 }
  0x37   : > { %1096 = dma.done.wait (%p1200_p6), %s223_s26, 256  }
  0x38   : > { %1098 = vsyncadd (%p1200_p6), %s223_s26, 4294967040  ;;  %v1122_v0 = vmov 0.0   ;;  %vm1123_vm0 = vmmov 0   ;;  %v1008_v1 = vld [vmem:[%s1421_s2] sm:$0xff]   ;;  %v1009_v2 = vld [vmem:[%s1421_s2 + $0x8] sm:$0xff]   ;;  %vm290_vm1 = vcmask 261120   ;;  %v336_v14 = vlaneseq }
  0x39   : > { %900 = vmatprep.subr.bf16.mxu0 %v1122_v0  ;;  %904 = vmatprep.mubr.msk.bf16.mxu0 %vm1123_vm0, %v1122_v0  ;;  %v1282_v3 = vld [vmem:[%s226_s28] sm:$0xff]  ;;  %v1284_v4 = vld [vmem:[%s226_s28 + $0x8] sm:$0xff]  ;;  %p258_p6 = scmp.lt.s32.totalorder %s1178_s22, 7  ;;  %vm345_vm2 = vcmask 130048   ;;  %s879_s11 = sshll.u32 %s1178_s22, 8 }
  0x3a   : > { %908 = vmatprep.subr.bf16.mxu1 %v1122_v0  ;;  %910 = vmatprep.mubr.msk.bf16.mxu1 %vm1123_vm0, %v1122_v0  ;;  %v277_v5 = vpack.c.bf16 %v1284_v4, %v1282_v3  ;;  %v1011_v12 = vld [vmem:[%s1422_s3] sm:$0xff]   ;;  %v1012_v13 = vld [vmem:[%s1422_s3 + $0x8] sm:$0xff]   ;;  %v1313_v15 = vshrl.u32 %v336_v14, 7  ;;  %v1013_v33 = vld [vmem:[%s1421_s2 + $0x10] sm:$0xff]   ;;  %s257_s13 = scalar_lea.vmem [#allocation5], %s843_s25  ;;  %s1373_s12 = scalar_lea.hbm %s1424_s5, %s879_s11 }
  0x3b   : > { %901 = vmatpush3.bf16.msra.mxu0 %v1008_v1  ;;  %s259_s16 = scalar_select %p258_p6, %s1178_s22, 7  ;;  %v1319_v17 = vld [vmem:[%s1423_s4] sm:$0xf]  ;;  %v1014_v34 = vld [vmem:[%s1421_s2 + $0x18] sm:$0xff]   ;;  %v1015_v53 = vld [vmem:[%s1422_s3 + $0x10] sm:$0xff]  }
  0x3c   : > { %902 = vmatprep.subr.bf16.mxu0 %v1122_v0  ;;  %v338_v16 = vsub.s32 0, %v1313_v15  ;;  %v452_v35 = vsub.s32 1, %v1313_v15  ;;  %v1016_v54 = vld [vmem:[%s1422_s3 + $0x18] sm:$0xff]   ;;  %v569_v55 = vsub.s32 2, %v1313_v15  ;;  %s751_s17 = sshll.u32 %s257_s13, 4  ;;  %s738_s22 = scalar_lea.sflag [#allocation4], %s1260_s23  ;;  %s1375_s17 = int_to_ptr.vmem [resolvable:$true] %s751_s17 }
  0x3d   : > { %s878_s8 = sshll.u32 %s259_s16, 3  ;;  %s1051_s14 = scalar_lea.vmem %s1375_s17, 256 }
  0x3e   : > { %s262_s10 = scalar_lea.vmem %s1419_s0, %s878_s8  ;;  %v339_v18 = vrot.slane %v1319_v17, %v338_v16  ;;  %v453_v36 = vrot.slane %v1319_v17, %v452_v35  ;;  %v570_v56 = vrot.slane %v1319_v17, %v569_v55  ;;  %p1052_p10 = scmp.ne.s32.totalorder %s1375_s17, %s1051_s14 }
  0x3f   : > { %903 = vmatpush3.bf16.msra.mxu0 %v1009_v2  ;;  %v1298_v11 = vld [vmem:[%s262_s10] sm:$0xff]   ;;  %p1431_p11 = scmp.ne.s32.totalorder %s1428_s30, 0  ;;  %s1124_s25 = smov [#allocation5]  }
  0x40   : > { %922 = vmatprep.subr.bf16.mxu0 %v1122_v0  ;;  %s1055_s29 = sshll.u32 %s1124_s25, 4  ;;  %s1056_s29 = int_to_ptr.vmem [resolvable:$false] %s1055_s29 }
  0x41   : > { %p1053_p12 = pnand %p1052_p10, %p1431_p11  ;;  %s1057_s15 = scalar_lea.vmem %s1056_s29, 512 }
  0x42   : > { %905 = vmatmul.mubr.msk.bf16.vlgmr.msra.gmra.mrb[0].mxu0 %vm290_vm1, %v277_v5  ;;  %p1058_p9 = scmp.lt.s32.totalorder %s1375_s17, %s1056_s29  ;;  %p1059_p13 = scmp.lt.s32.totalorder %s1057_s15, %s1051_s14 }
  0x43   : > { %924 = vmatprep.mubr.msk.bf16.mxu0 %vm1123_vm0, %v1122_v0  ;;  %p1054_p8 = pneg %p1053_p12 }
  0x44   : > { %p1060_p1 = por %p1059_p13, %p1058_p9 }
  0x46   : > { %p1061_p3 = pnand %p1060_p1, %p1054_p8 }
 0x115   : > { %v328_v6 = vpop.f32.mrb[0].mxu0 }
 0x116   : > { %v906_v7 = vpop.f32.mrb[1].mxu0 }
 0x117   : > { %v331_v8 = vpop.f32.mrb[2].mxu0  ;;  %v674_v7 = vsub.s32 3, %v1313_v15 }
 0x118   : > { %v335_v9 = vpack.c.bf16 %v331_v8, %v328_v6  ;;  %v907_v10 = vpop.f32.mrb[3].mxu0 }
 0x119   : > { %v675_v8 = vrot.slane %v1319_v17, %v674_v7 }
 0x11a   : > { %909 = vmatpush3.bf16.msra.mxu1 %v335_v9 }
 0x11b   : > { %914 = vmatprep.subr.bf16.mxu1 %v1122_v0 }
 0x11d   : > { %911 = vmatmul.mubr.msk.bf16.vlgmr.msra.gmra.mrb[0].mxu1 %vm345_vm2, %v1298_v11 }
 0x11e   : > { %918 = vmatprep.mubr.msk.bf16.mxu1 %vm1123_vm0, %v1122_v0  ;;  %915 = vmatpush3.bf16.msra.mxu1 %v1011_v12 }
 0x11f   : > { %916 = vmatprep.subr.bf16.mxu1 %v1122_v0 }
 0x122   : > { %917 = vmatpush3.bf16.msra.mxu1 %v1012_v13 }
 0x123   : > { %928 = vmatprep.subr.bf16.mxu1 %v1122_v0 }
 0x1f0   : > { %v383_v19 = vpop.f32.mrb[0].mxu1 }
 0x1f1   : > { %v384_v20 = vadd.f32 %v383_v19, %v339_v18  ;;  %v912_v21 = vpop.f32.mrb[1].mxu1 }
 0x1f2   : > { %v386_v22 = vpop.f32.mrb[2].mxu1 }
 0x1f3   : > { %v387_v23 = vadd.f32 %v386_v22, %v339_v18  ;;  %v913_v24 = vpop.f32.mrb[3].mxu1  ;;  %v390_v25 = vmax.f32 %v384_v20, 0.0 }
 0x1f5   : > { %v391_v26 = vmax.f32 %v387_v23, 0.0 }
 0x1f7   : > { %v392_v27 = vpack.c.bf16 %v391_v26, %v390_v25 }
 0x1f9   : > { %919 = vmatmul.mubr.msk.bf16.vlgmr.msra.gmra.mrb[4].mxu1 %vm290_vm1, %v392_v27 }
 0x1fa   : > { %932 = vmatprep.mubr.msk.bf16.mxu1 %vm1123_vm0, %v1122_v0  ;;  %929 = vmatpush3.bf16.msra.mxu1 %v1013_v33 }
 0x1fb   : > { %930 = vmatprep.subr.bf16.mxu1 %v1122_v0 }
 0x1fe   : > { %931 = vmatpush3.bf16.msra.mxu1 %v1014_v34 }
 0x1ff   : > { %942 = vmatprep.subr.bf16.mxu1 %v1122_v0 }
 0x2cc   : > { %v442_v28 = vpop.f32.mrb[4].mxu1 }
 0x2cd   : > { %v920_v29 = vpop.f32.mrb[5].mxu1 }
 0x2ce   : > { %v445_v30 = vpop.f32.mrb[6].mxu1 }
 0x2cf   : > { %v449_v31 = vpack.c.bf16 %v445_v30, %v442_v28  ;;  %v921_v32 = vpop.f32.mrb[7].mxu1 }
 0x2d1   : > { %923 = vmatpush3.bf16.msra.mxu0 %v449_v31 }
 0x2d2   : > { %936 = vmatprep.subr.bf16.mxu0 %v1122_v0 }
 0x2d4   : > { %925 = vmatmul.mubr.msk.bf16.vlgmr.msra.gmra.mrb[4].mxu0 %vm345_vm2, %v1298_v11 }
 0x2d5   : > { %938 = vmatprep.mubr.msk.bf16.mxu0 %vm1123_vm0, %v1122_v0 }
 0x3a7   : > { %v488_v37 = vpop.f32.mrb[4].mxu0 }
 0x3a8   : > { %v489_v38 = vadd.f32 %v488_v37, %v453_v36  ;;  %v926_v39 = vpop.f32.mrb[5].mxu0 }
 0x3a9   : > { %v491_v40 = vpop.f32.mrb[6].mxu0 }
 0x3aa   : > { %v495_v41 = vadd.f32 %v489_v38, %v1282_v3  ;;  %v492_v42 = vadd.f32 %v491_v40, %v453_v36  ;;  %v927_v43 = vpop.f32.mrb[7].mxu0 }
 0x3ac   : > { %v496_v44 = vadd.f32 %v492_v42, %v1284_v4  ;;  %v497_v45 = vmax.f32 %v495_v41, 0.0 }
 0x3ae   : > { %v498_v46 = vmax.f32 %v496_v44, 0.0 }
 0x3b0   : > { %v509_v47 = vpack.c.bf16 %v498_v46, %v497_v45 }
 0x3b2   : > { %933 = vmatmul.mubr.msk.bf16.vlgmr.msra.gmra.mrb[8].mxu1 %vm290_vm1, %v509_v47 }
 0x3b3   : > { %946 = vmatprep.mubr.msk.bf16.mxu1 %vm1123_vm0, %v1122_v0  ;;  %943 = vmatpush3.bf16.msra.mxu1 %v1015_v53 }
 0x3b4   : > { %944 = vmatprep.subr.bf16.mxu1 %v1122_v0 }
 0x3b7   : > { %945 = vmatpush3.bf16.msra.mxu1 %v1016_v54 }
 0x485   : > { %v559_v48 = vpop.f32.mrb[8].mxu1 }
 0x486   : > { %v934_v49 = vpop.f32.mrb[9].mxu1 }
 0x487   : > { %v562_v50 = vpop.f32.mrb[10].mxu1 }
 0x488   : > { %v566_v51 = vpack.c.bf16 %v562_v50, %v559_v48  ;;  %v935_v52 = vpop.f32.mrb[11].mxu1 }
 0x48a   : > { %937 = vmatpush3.bf16.msra.mxu0 %v566_v51 }
 0x48b   : > { %950 = vmatprep.subr.bf16.mxu0 %v1122_v0 }
 0x48d   : > { %939 = vmatmul.mubr.msk.bf16.vlgmr.msra.gmra.mrb[8].mxu0 %vm345_vm2, %v1298_v11 }
 0x48e   : > { %952 = vmatprep.mubr.msk.bf16.mxu0 %vm1123_vm0, %v1122_v0 }
 0x560   : > { %v605_v57 = vpop.f32.mrb[8].mxu0 }
 0x561   : > { %v606_v58 = vadd.f32 %v605_v57, %v570_v56  ;;  %v940_v59 = vpop.f32.mrb[9].mxu0 }
 0x562   : > { %v608_v60 = vpop.f32.mrb[10].mxu0 }
 0x563   : > { %v609_v61 = vadd.f32 %v608_v60, %v570_v56  ;;  %v941_v62 = vpop.f32.mrb[11].mxu0  ;;  %v612_v63 = vmax.f32 %v606_v58, 0.0 }
 0x565   : > { %v613_v1 = vmax.f32 %v609_v61, 0.0 }
 0x567   : > { %v614_v2 = vpack.c.bf16 %v613_v1, %v612_v63 }
 0x569   : > { %947 = vmatmul.mubr.msk.bf16.vlgmr.msra.gmra.mrb[12].mxu1 %vm290_vm1, %v614_v2 }
 0x63c   : > { %v664_v0 = vpop.f32.mrb[12].mxu1 }
 0x63d   : > { %v948_v3 = vpop.f32.mrb[13].mxu1 }
 0x63e   : > { %v667_v4 = vpop.f32.mrb[14].mxu1 }
 0x63f   : > { %v671_v5 = vpack.c.bf16 %v667_v4, %v664_v0  ;;  %v949_v6 = vpop.f32.mrb[15].mxu1 }
 0x641   : > { %951 = vmatpush3.bf16.msra.mxu0 %v671_v5 }
 0x644   : > { %953 = vmatmul.mubr.msk.bf16.vlgmr.msra.gmra.mrb[12].mxu0 %vm345_vm2, %v1298_v11 }
 0x717   : > { %v710_v9 = vpop.f32.mrb[12].mxu0 }
 0x718   : > { %v711_v10 = vadd.f32 %v710_v9, %v675_v8  ;;  %v954_v12 = vpop.f32.mrb[13].mxu0 }
 0x719   : > { %v713_v13 = vpop.f32.mrb[14].mxu0 }
 0x71a   : > { %v717_v14 = vadd.f32 %v711_v10, %v497_v45  ;;  %v714_v16 = vadd.f32 %v713_v13, %v675_v8  ;;  %v955_v18 = vpop.f32.mrb[15].mxu0 }
 0x71c   : > { %v719_v19 = vmax.f32 %v717_v14, 0.0  ;;  %v718_v20 = vadd.f32 %v714_v16, %v498_v46 }
 0x71e   : > { %v720_v21 = vmax.f32 %v718_v20, 0.0  ;;  %v721_v22 = vmul.f32 %v719_v19, %v719_v19 }
 0x720   : > { %v723_v23 = vsel %vm290_vm1, %v721_v22, 0.0  ;;  %v722_v11 = vmul.f32 %v720_v21, %v720_v21 }
 0x721   : > { %724 = vadd.xlane.f32.xlu0 %v723_v23 }
 0x722   : > { %v726_v15 = vsel %vm290_vm1, %v722_v11, 0.0 }
 0x725   : > { %727 = vadd.xlane.f32.xlu0 %v726_v15 }
 0x7ae   : > { %v725_v17 = vpop.xlane.xlu0 %724 }
 0x7af   : > { %v729_v24 = vmax.f32 %v725_v17, 1e-24 }
 0x7b1   : > { %1017 = vrsqrt.f32 %v729_v24 }
 0x7b2   : > { %v728_v25 = vpop.xlane.xlu0 %727 }
 0x7b3   : > { %v730_v26 = vmax.f32 %v728_v25, 1e-24 }
 0x7b5   : > { %1019 = vrsqrt.f32 %v730_v26 }
 0x7bb   : > { %v1018_v27 = vpop.eup %1017 }
 0x7bc   : > { %v733_v28 = vmul.f32 %v1018_v27, %v719_v19 }
 0x7be   : > { %735 = vst.msk [vmem:[%s257_s13] sm:$0xff] %vm290_vm1, %v733_v28 }
 0x7bf   : > { %v1020_v29 = vpop.eup %1019 }
 0x7c0   : > { %v734_v30 = vmul.f32 %v1020_v29, %v720_v21 }
 0x7c2   : > { %736 = vst.msk [vmem:[%s257_s13 + $0x8] sm:$0xff] %vm290_vm1, %v734_v30 }
 0x7c3   : > { %1064 = shalt.err (!%p1061_p3)
}
 0x7c4   : > { %s1065_s16 = scalar_lea.hbm %s1373_s12, 256  ;;  %s1069_s9 = scalar_lea.hbm %s1424_s5, 2048 }
 0x7c5   : > { %p1066_p4 = scmp.ne.s32.totalorder %s1373_s12, %s1065_s16  ;;  %p1070_p2 = scmp.lt.u32.totalorder %s1373_s12, %s1424_s5 }
 0x7c6   : > { %p1071_p7 = scmp.lt.u32.totalorder %s1069_s9, %s1065_s16  ;;  %p1073_p10 = scmp.lt.u32.totalorder %s1065_s16, %s1373_s12 }
 0x7c7   : > { %p1067_p5 = pnand %p1066_p4, %p1431_p11 }
 0x7c8   : > { %p1072_p6 = por %p1071_p7, %p1070_p2 }
 0x7c9   : > { %p1068_p0 = pneg %p1067_p5 }
 0x7ca   : > { %p1074_p12 = por %p1073_p10, %p1072_p6 }
 0x7cc   : > { %p1075_p8 = pnand %p1074_p12, %p1068_p0 }
 0x7ce   : > { %1078 = shalt.err (!%p1075_p8)
}
 0x7cf   : > { %s1125_s13 = smov 128   ;;  %s1126_s26 = smov 8  }
 0x7d0   : > { %958 = dma.vmem_to_hbm [thread:$0]  (%p1431_p11), %s1375_s17, 256, %s1373_s12, %s738_s22, %s1125_s13, %s1125_s13, %s1126_s26  }
 0x7d1 PF: > { %p969_p9 = scmp.ge.s32.totalorder %s1117_s21, 2  ;;  %s766_s28 = sand.u32 1, %s1105_s18  }
 0x7d2   : > { %p1432_p13 = scmp.ne.s32.totalorder %s1429_s6, 0  ;;  %s767_s14 = scalar_lea.sflag [#allocation4], %s766_s28 }
 0x7d4   : > { %p965_p1 = pnand %p969_p9, %p1432_p13 }
 0x7d6   : > { %1100 = dma.done.wait (!%p965_p1), %s767_s14, 256  }
 0x7d7   : > { %1102 = vsyncadd (!%p965_p1), %s767_s14, 4294967040  ;;  %p18_p3 = scmp.ge.s32.totalorder %s1182_s24, 10   ;;  %s1433_s18 = smov %s1109_s19 }
 0x7d8   : > { %s1434_s19 = smov %s1113_s20  ;;  %s1435_s20 = smov %s1194_s27 }
 0x7d9   : > { %s1436_s21 = smov %s1182_s24  ;;  %20 = sbr.rel (!%p18_p3) target bundleno = 5 (0x5), region = 90 }
 0x7e0   :  { %772 = vsyncpa [#allocation3], 1 }
 0x7e1   :  { %774 = vsyncpa [#allocation3 + $0x1], 1 }
 0x7e2   :  { %775 = vsyncpa [#allocation4], 1 }
 0x7e3   :  { %777 = vsyncpa [#allocation4 + $0x1], 1 }

</bundles_post_ra>
